<compile_context>
chip_gen: v5e
topology: v5e:2x2
jax: 0.10.0
libtpu: 0.0.40
codegen_flags: <defaults>
</compile_context>

<pallas_src>
import functools

import jax
import jax.numpy as jnp
import numpy as np
from jax import lax
from jax.experimental import pallas as pl
from jax.experimental.pallas import tpu as pltpu

LANE = 128
SUBLANE = 8


def _round_up(a, b):
    return ((a + b - 1) // b) * b


# -----------------------------------------------------------------------------
# Kernel: one (batch, L-tile) block of the TemporalBlock forward.
# -----------------------------------------------------------------------------
def temporal_block_kernel(xh_ref, xm_ref, w1_ref, b1_ref, w2_ref, b2_ref,
                          bds_ref, o_ref, *,
                          kernel_size, dilation, padding, halo,
                          has_downsample, compute_dtype):
    TL = xm_ref.shape[1]                      # tile length
    CoutP = o_ref.shape[2]
    t = pl.program_id(1)

    xh = xh_ref[0]                            # (halo, CP) causal history (compute dtype)
    xm = xm_ref[0]                            # (TL,   CP) current tile rows
    # row r of xw corresponds to sequence position t*TL - halo + r
    xw = jnp.concatenate([xh, xm], axis=0)    # (halo + TL, CP)

    # ---- conv1 (+ optional fused 1x1 downsample columns) as ONE im2col matmul
    # h1 rows cover positions [t*TL - padding, t*TL + TL)
    lh1 = TL + padding
    base = halo - 2 * padding                 # >= 0 by construction
    taps1 = [xw[base + j * dilation: base + j * dilation + lh1, :]
             for j in range(kernel_size)]
    slab1 = jnp.concatenate(taps1, axis=-1)   # (lh1, K*CP), already compute dtype
    fused = jnp.dot(slab1, w1_ref[...], preferred_element_type=jnp.float32)

    if has_downsample:
        # extra columns hold the 1x1 downsample; its valid input (xm[r']) sits in
        # the last-tap row block of slab1 at row r' + padding.
        h1 = fused[:, :CoutP]
        res = fused[padding:, CoutP:] + bds_ref[...]          # f32
    else:
        h1 = fused
        res = xm.astype(jnp.float32)           # identity skip; keep the add in f32

    h1 = jnp.maximum(h1 + b1_ref[...], 0.0)    # f32
    # h1 rows at positions < 0 are conv2's zero padding (NOT conv1 applied to
    # zero input, which would be relu(b1)); mask them.  Only tile t == 0 has such rows.
    row = lax.broadcasted_iota(jnp.int32, (lh1, CoutP), 0)
    h1 = jnp.where(row + t * TL - padding >= 0, h1, 0.0)

    # ---- conv2 (causal dilated) as ONE im2col matmul ------------------------
    h1c = h1.astype(compute_dtype)             # single cast, reused by all taps
    taps2 = [h1c[j * dilation: j * dilation + TL, :] for j in range(kernel_size)]
    slab2 = jnp.concatenate(taps2, axis=-1)    # (TL, K*CoutP)
    h2 = jnp.dot(slab2, w2_ref[...], preferred_element_type=jnp.float32)
    h2 = jnp.maximum(h2 + b2_ref[...], 0.0)

    # ---- final ReLU(out + res), lane-dense (CoutP multiple of 128) store -----
    o_ref[0] = jnp.maximum(h2 + res, 0.0).astype(o_ref.dtype)


# -----------------------------------------------------------------------------
# Wrapper
# -----------------------------------------------------------------------------
def _vmem_budget_and_default_tile():
    try:
        vmem_cap = int(pltpu.get_tpu_info().vmem_capacity_bytes)
    except Exception:
        vmem_cap = 64 * 1024 * 1024            # conservative (v7x-sized) fallback
    if vmem_cap >= 96 * 1024 * 1024:           # v5e / v6e: 128 MiB physical VMEM
        return 100 * 1024 * 1024, 2048
    return 48 * 1024 * 1024, 1024              # v7x: 64 MiB physical VMEM


def temporal_block(x_ncl, params, *, kernel_size, dilation, padding,
                   compute_dtype=jnp.bfloat16, out_dtype=jnp.float32,
                   max_tile_len=None):
    """x_ncl: (B, C_in, L) float32, like the PyTorch module's input."""
    B, Cin, L = x_ncl.shape
    Cout = params["n_outputs"]
    assert Cin == params["n_inputs"]
    assert padding == (kernel_size - 1) * dilation and padding > 0, \
        "kernel assumes standard causal-TCN padding = (kernel_size-1)*dilation"

    K = kernel_size
    CP = params["w1_slab"].shape[0] // K          # lane-padded C_in
    CoutP = params["w1_slab"].shape[1]            # lane-padded C_out
    has_downsample = params.get("wds_slab") is not None
    if not has_downsample:
        assert CP == CoutP and Cin == Cout

    vmem_budget, default_tl = _vmem_budget_and_default_tile()
    if max_tile_len is None:
        max_tile_len = default_tl

    itemsize = jnp.dtype(compute_dtype).itemsize
    min_itemsize = min(itemsize, jnp.dtype(out_dtype).itemsize)
    native_sub = SUBLANE * (4 // min_itemsize)    # 8 for f32, 16 for bf16 tiles
    halo = _round_up(2 * padding, native_sub)     # causal x lookback rows per tile

    n1 = 2 * CoutP if has_downsample else CoutP   # conv1 matmul N (fused downsample)
    # crude per-row working-set estimate so im2col temps stay inside the VMEM budget
    bytes_per_row = ((K * CP + K * CoutP + CP) * itemsize      # slab1, slab2, xm
                     + (n1 + 3 * CoutP) * 4                    # fused/h1/h2/res (f32)
                     + CoutP * jnp.dtype(out_dtype).itemsize)  # output row
    tl_cap = max(halo, int((vmem_budget // 3) // max(bytes_per_row, 1)))

    req = min(max_tile_len, _round_up(max(L, SUBLANE), SUBLANE))
    TL = max(halo, _round_up(min(req, tl_cap), halo))
    L_ceil = _round_up(L, TL)
    n_tiles = L_ceil // TL

    # NCL -> NLC in the compute dtype (halves transpose/pad traffic for bf16);
    # lane-pad channels to 128; left-pad time by one full tile of zeros (causal
    # halo of the first tile); right-pad to a TL multiple.
    # TODO(synk): when stacking blocks into a full TCN, keep activations in NLC
    # (channels-last, 128-padded, bf16) between blocks and hoist these
    # transposes/pads to the ends of the network instead of once per block.
    x_nlc = jnp.transpose(x_ncl.astype(compute_dtype), (0, 2, 1))
    x_pad = jnp.pad(x_nlc, ((0, 0), (TL, L_ceil - L), (0, CP - Cin)))

    if has_downsample:
        # fuse the 1x1 downsample as extra output columns of w1: wds lives in the
        # last-tap (j = K-1) row block, zeros elsewhere.
        wds_block = jnp.zeros((K * CP, CoutP), jnp.float32)
        wds_block = wds_block.at[(K - 1) * CP:, :].set(params["wds_slab"])
        w1_eff = jnp.concatenate([params["w1_slab"], wds_block], axis=1)
        bds = params["bds_pad"]
    else:
        w1_eff = params["w1_slab"]
        bds = jnp.zeros((1, CoutP), jnp.float32)   # unused dummy
    w1_eff = w1_eff.astype(compute_dtype)
    w2 = params["w2_slab"].astype(compute_dtype)

    kern = functools.partial(
        temporal_block_kernel,
        kernel_size=K, dilation=dilation, padding=padding, halo=halo,
        has_downsample=has_downsample, compute_dtype=compute_dtype)

    tlh = TL // halo
    const2 = lambda b, t: (0, 0)
    in_specs = [
        # causal halo: the `halo` rows immediately before the current tile
        pl.BlockSpec((1, halo, CP), lambda b, t: (b, (t + 1) * tlh - 1, 0)),
        # the current tile of x
        pl.BlockSpec((1, TL, CP), lambda b, t: (b, t + 1, 0)),
        # TODO(synk): weights are still double-buffered despite constant index_maps;
        # for very wide channels on v7x consider single-buffering them or smaller TL.
        pl.BlockSpec((K * CP, n1), const2),           # w1 (+fused downsample cols)
        pl.BlockSpec((1, CoutP), const2),             # b1
        pl.BlockSpec((K * CoutP, CoutP), const2),     # w2
        pl.BlockSpec((1, CoutP), const2),             # b2
        pl.BlockSpec((1, CoutP), const2),             # bds
    ]
    out_specs = pl.BlockSpec((1, TL, CoutP), lambda b, t: (b, t, 0))

    out_pad = pl.pallas_call(
        kern,
        out_shape=jax.ShapeDtypeStruct((B, L_ceil, CoutP), out_dtype),
        grid_spec=pltpu.PrefetchScalarGridSpec(
            num_scalar_prefetch=0,
            grid=(B, n_tiles),
            in_specs=in_specs,
            out_specs=out_specs),
        compiler_params=pltpu.CompilerParams(
            dimension_semantics=("parallel", "parallel"),
            vmem_limit_bytes=vmem_budget),
    )(x_pad, x_pad, w1_eff, params["b1_pad"], w2, params["b2_pad"], bds)

    # drop channel/length padding, back to NCL
    return jnp.transpose(out_pad[:, :L, :Cout], (0, 2, 1))


# -----------------------------------------------------------------------------
# Parameter construction (deterministic, mirrors nn.Conv1d + weight_norm)
# -----------------------------------------------------------------------------
def weight_norm_effective(v, g):
    # torch.nn.utils.weight_norm with dim=0: per-output-channel L2 norm
    norm = jnp.sqrt(jnp.sum(v * v, axis=(1, 2), keepdims=True))
    return g[:, None, None] * v / norm


def make_params(key, n_inputs, n_outputs, kernel_size, with_downsample=None):
    if with_downsample is None:
        with_downsample = (n_inputs != n_outputs)   # PyTorch TemporalBlock rule
    ks = jax.random.split(key, 8)
    v1 = 0.01 * jax.random.normal(ks[0], (n_outputs, n_inputs, kernel_size), jnp.float32)
    g1 = 1.0 + 0.1 * jax.random.normal(ks[1], (n_outputs,), jnp.float32)
    b1 = 0.01 * jax.random.normal(ks[2], (n_outputs,), jnp.float32)
    v2 = 0.01 * jax.random.normal(ks[3], (n_outputs, n_outputs, kernel_size), jnp.float32)
    g2 = 1.0 + 0.1 * jax.random.normal(ks[4], (n_outputs,), jnp.float32)
    b2 = 0.01 * jax.random.normal(ks[5], (n_outputs,), jnp.float32)

    w1 = weight_norm_effective(v1, g1)              # (Cout, Cin, K)  OIH
    w2 = weight_norm_effective(v2, g2)              # (Cout, Cout, K)

    K = kernel_size
    CP = _round_up(n_inputs, LANE)
    CoutP = _round_up(n_outputs, LANE)

    def to_slab(w_oik, cin_p):
        # (Cout, Cin, K) OIH -> lane-padded im2col weight (K*cin_p, CoutP)
        cout, cin, _ = w_oik.shape
        w_kio = jnp.transpose(w_oik, (2, 1, 0))     # (K, Cin, Cout)
        slab = jnp.zeros((K * cin_p, CoutP), jnp.float32)
        for j in range(K):
            slab = slab.at[j * cin_p:j * cin_p + cin, :cout].set(w_kio[j])
        return slab

    def pad_bias(b):
        return jnp.pad(b, (0, CoutP - b.shape[0])).reshape(1, CoutP)

    params = {
        "n_inputs": n_inputs, "n_outputs": n_outputs,
        "w1_slab": to_slab(w1, CP), "b1_pad": pad_bias(b1),
        "w2_slab": to_slab(w2, CoutP), "b2_pad": pad_bias(b2),
        # raw OIH weights kept only for the pure-JAX reference check
        "_w1": w1, "_b1": b1, "_w2": w2, "_b2": b2,
    }
    if with_downsample:
        wds = 0.01 * jax.random.normal(ks[6], (n_outputs, n_inputs, 1), jnp.float32)
        bds = 0.01 * jax.random.normal(ks[7], (n_outputs,), jnp.float32)
        wds_mat = jnp.transpose(wds[:, :, 0], (1, 0))           # (Cin, Cout)
        params["wds_slab"] = (jnp.zeros((CP, CoutP), jnp.float32)
                              .at[:n_inputs, :n_outputs].set(wds_mat))
        params["bds_pad"] = pad_bias(bds)
        params["_wds"] = wds
        params["_bds"] = bds
    else:
        params["wds_slab"] = None
        params["bds_pad"] = None
    return params


# -----------------------------------------------------------------------------
# Pure-JAX reference (mirrors the PyTorch forward, inference mode)
# -----------------------------------------------------------------------------
def reference_forward(x, p, *, dilation, padding):
    def conv1d(z, w, b, pad, dil):
        y = lax.conv_general_dilated(
            z, w, window_strides=(1,), padding=[(pad, pad)],
            rhs_dilation=(dil,), dimension_numbers=("NCH", "OIH", "NCH"))
        return y + b[None, :, None]

    L = x.shape[-1]
    h = jnp.maximum(conv1d(x, p["_w1"], p["_b1"], padding, dilation)[:, :, :L], 0.0)
    h = jnp.maximum(conv1d(h, p["_w2"], p["_b2"], padding, dilation)[:, :, :L], 0.0)
    if p.get("_wds") is not None:
        res = conv1d(x, p["_wds"], p["_bds"], 0, 1)       # downsample 1x1 conv
    else:
        res = x                                           # identity residual
    return jnp.maximum(h + res, 0.0)


# -----------------------------------------------------------------------------
if __name__ == "__main__":
    B, C_IN, C_OUT, L = 2, 4, 8, 16
    KSIZE, DILATION = 3, 2
    PADDING = (KSIZE - 1) * DILATION          # 4, standard TCN causal padding

    key = jax.random.PRNGKey(0)
    kx, kp, kp2 = jax.random.split(key, 3)
    x = jax.random.normal(kx, (B, C_IN, L), jnp.float32)   # (Batch, C_in, seq_len)
    params = make_params(kp, C_IN, C_OUT, KSIZE)

    # f32 run (compute_dtype=f32): must match the PyTorch-equivalent reference tightly.
    out = jax.block_until_ready(
        temporal_block(x, params, kernel_size=KSIZE, dilation=DILATION,
                       padding=PADDING, compute_dtype=jnp.float32))
    ref = jax.block_until_ready(
        reference_forward(x, params, dilation=DILATION, padding=PADDING))
    assert out.shape == (B, C_OUT, L)
    np.testing.assert_allclose(np.asarray(out), np.asarray(ref),
                               rtol=1e-5, atol=1e-5)

    # identity-residual configuration (n_inputs == n_outputs -> no downsample conv)
    x2 = jax.random.normal(kx, (B, C_OUT, L), jnp.float32)
    params2 = make_params(kp2, C_OUT, C_OUT, KSIZE)
    out2 = jax.block_until_ready(
        temporal_block(x2, params2, kernel_size=KSIZE, dilation=DILATION,
                       padding=PADDING, compute_dtype=jnp.float32))
    ref2 = jax.block_until_ready(
        reference_forward(x2, params2, dilation=DILATION, padding=PADDING))
    np.testing.assert_allclose(np.asarray(out2), np.asarray(ref2),
                               rtol=1e-5, atol=1e-5)

    # default path (bf16 activations + bf16 MXU operands, f32 accumulation):
    # loose check vs the f32 reference.
    out_bf16 = jax.block_until_ready(
        temporal_block(x, params, kernel_size=KSIZE, dilation=DILATION,
                       padding=PADDING))
    np.testing.assert_allclose(np.asarray(out_bf16), np.asarray(ref),
                               rtol=0.1, atol=0.2)

    # multi-tile grid (exercises the causal halo + fused downsample across tiles)
    L2 = 320
    x3 = jax.random.normal(jax.random.fold_in(kx, 3), (B, C_IN, L2), jnp.float32)
    out3 = jax.block_until_ready(
        temporal_block(x3, params, kernel_size=KSIZE, dilation=DILATION,
                       padding=PADDING, compute_dtype=jnp.float32,
                       max_tile_len=64))
    ref3 = jax.block_until_ready(
        reference_forward(x3, params, dilation=DILATION, padding=PADDING))
    np.testing.assert_allclose(np.asarray(out3), np.asarray(ref3),
                               rtol=1e-5, atol=1e-5)

    print("KERNEL_OK")
</pallas_src>

<mosaic_0001>
module attributes {stable_mosaic.version = 11 : i64} {
  func.func @temporal_block_kernel(%arg0: i32, %arg1: i32, %arg2: memref<1x8x128xf32, #tpu.memory_space<vmem>>, %arg3: memref<1x16x128xf32, #tpu.memory_space<vmem>>, %arg4: memref<384x256xf32, #tpu.memory_space<vmem>>, %arg5: memref<1x128xf32, #tpu.memory_space<vmem>>, %arg6: memref<384x128xf32, #tpu.memory_space<vmem>>, %arg7: memref<1x128xf32, #tpu.memory_space<vmem>>, %arg8: memref<1x128xf32, #tpu.memory_space<vmem>>, %arg9: memref<1x16x128xf32, #tpu.memory_space<vmem>>) attributes {dimension_semantics = [#tpu.dimension_semantics<parallel>, #tpu.dimension_semantics<parallel>], iteration_bounds = array<i64: 2, 1>, scalar_prefetch = 0 : i64, scratch_operands = 0 : i64, tpu.core_type = #tpu.core_type<tc>, window_params = [{transform_indices = @transform_0, window_bounds = array<i64: 1, 8, 128>}, {transform_indices = @transform_1, window_bounds = array<i64: 1, 16, 128>}, {pipeline_mode = #tpu.pipeline_mode<synchronous>, transform_indices = @transform_2, window_bounds = array<i64: 384, 256>}, {pipeline_mode = #tpu.pipeline_mode<synchronous>, transform_indices = @transform_3, window_bounds = array<i64: 1, 128>}, {pipeline_mode = #tpu.pipeline_mode<synchronous>, transform_indices = @transform_4, window_bounds = array<i64: 384, 128>}, {pipeline_mode = #tpu.pipeline_mode<synchronous>, transform_indices = @transform_5, window_bounds = array<i64: 1, 128>}, {pipeline_mode = #tpu.pipeline_mode<synchronous>, transform_indices = @transform_6, window_bounds = array<i64: 1, 128>}, {transform_indices = @transform_7, window_bounds = array<i64: 1, 16, 128>}]} {
    %c0 = arith.constant 0 : index
    %c0_0 = arith.constant 0 : index
    %c0_1 = arith.constant 0 : index
    %0 = vector.load %arg2[%c0, %c0_0, %c0_1] : memref<1x8x128xf32, #tpu.memory_space<vmem>>, vector<1x8x128xf32>
    %1 = vector.shape_cast %0 : vector<1x8x128xf32> to vector<8x128xf32>
    %c0_2 = arith.constant 0 : index
    %c0_3 = arith.constant 0 : index
    %c0_4 = arith.constant 0 : index
    %2 = vector.load %arg3[%c0_2, %c0_3, %c0_4] : memref<1x16x128xf32, #tpu.memory_space<vmem>>, vector<1x16x128xf32>
    %3 = vector.shape_cast %2 : vector<1x16x128xf32> to vector<16x128xf32>
    %4 = tpu.concatenate %1, %3 in 0 : vector<8x128xf32>, vector<16x128xf32> -> vector<24x128xf32>
    %5 = vector.extract_strided_slice %4 {offsets = [0, 0], sizes = [20, 128], strides = [1, 1]} : vector<24x128xf32> to vector<20x128xf32>
    %6 = vector.extract_strided_slice %4 {offsets = [2, 0], sizes = [20, 128], strides = [1, 1]} : vector<24x128xf32> to vector<20x128xf32>
    %7 = vector.extract_strided_slice %4 {offsets = [4, 0], sizes = [20, 128], strides = [1, 1]} : vector<24x128xf32> to vector<20x128xf32>
    %8 = tpu.concatenate %5, %6, %7 in 1 : vector<20x128xf32>, vector<20x128xf32>, vector<20x128xf32> -> vector<20x384xf32>
    %c0_5 = arith.constant 0 : index
    %c0_6 = arith.constant 0 : index
    %9 = vector.load %arg4[%c0_5, %c0_6] : memref<384x256xf32, #tpu.memory_space<vmem>>, vector<384x256xf32>
    %cst = arith.constant dense<0.000000e+00> : vector<20x256xf32>
    %10 = tpu.matmul %8, %9, %cst {dimension_numbers = #tpu.dot_dimension_numbers<[1], [0], [0], [1], [0, 0, 1, 1], [], []>} : vector<20x384xf32>, vector<384x256xf32>, vector<20x256xf32> -> vector<20x256xf32>
    %11 = vector.extract_strided_slice %10 {offsets = [0, 0], sizes = [20, 128], strides = [1, 1]} : vector<20x256xf32> to vector<20x128xf32>
    %12 = vector.extract_strided_slice %10 {offsets = [4, 128], sizes = [16, 128], strides = [1, 1]} : vector<20x256xf32> to vector<16x128xf32>
    %c0_7 = arith.constant 0 : index
    %c0_8 = arith.constant 0 : index
    %13 = vector.load %arg8[%c0_7, %c0_8] : memref<1x128xf32, #tpu.memory_space<vmem>>, vector<1x128xf32>
    %14 = vector.broadcast %13 : vector<1x128xf32> to vector<16x128xf32>
    %15 = arith.addf %12, %14 : vector<16x128xf32>
    %c0_9 = arith.constant 0 : index
    %c0_10 = arith.constant 0 : index
    %16 = vector.load %arg5[%c0_9, %c0_10] : memref<1x128xf32, #tpu.memory_space<vmem>>, vector<1x128xf32>
    %17 = vector.broadcast %16 : vector<1x128xf32> to vector<20x128xf32>
    %18 = arith.addf %11, %17 : vector<20x128xf32>
    %cst_11 = arith.constant 0.000000e+00 : f32
    %19 = vector.broadcast %cst_11 : f32 to vector<20x128xf32>
    %20 = arith.maximumf %18, %19 : vector<20x128xf32>
    %21 = tpu.iota {dimensions = array<i32: 0>} : vector<20x128xi32>
    %c16_i32 = arith.constant 16 : i32
    %22 = arith.muli %arg1, %c16_i32 : i32
    %23 = vector.broadcast %22 : i32 to vector<20x128xi32>
    %24 = arith.addi %21, %23 : vector<20x128xi32>
    %c4_i32 = arith.constant 4 : i32
    %25 = vector.broadcast %c4_i32 : i32 to vector<20x128xi32>
    %26 = arith.subi %24, %25 : vector<20x128xi32>
    %c0_i32 = arith.constant 0 : i32
    %27 = vector.broadcast %c0_i32 : i32 to vector<20x128xi32>
    %28 = arith.cmpi sge, %26, %27 : vector<20x128xi32>
    %cst_12 = arith.constant 0.000000e+00 : f32
    %29 = vector.broadcast %cst_12 : f32 to vector<20x128xf32>
    %30 = arith.select %28, %20, %29 : vector<20x128xi1>, vector<20x128xf32>
    %31 = vector.extract_strided_slice %30 {offsets = [0, 0], sizes = [16, 128], strides = [1, 1]} : vector<20x128xf32> to vector<16x128xf32>
    %32 = vector.extract_strided_slice %30 {offsets = [2, 0], sizes = [16, 128], strides = [1, 1]} : vector<20x128xf32> to vector<16x128xf32>
    %33 = vector.extract_strided_slice %30 {offsets = [4, 0], sizes = [16, 128], strides = [1, 1]} : vector<20x128xf32> to vector<16x128xf32>
    %34 = tpu.concatenate %31, %32, %33 in 1 : vector<16x128xf32>, vector<16x128xf32>, vector<16x128xf32> -> vector<16x384xf32>
    %c0_13 = arith.constant 0 : index
    %c0_14 = arith.constant 0 : index
    %35 = vector.load %arg6[%c0_13, %c0_14] : memref<384x128xf32, #tpu.memory_space<vmem>>, vector<384x128xf32>
    %cst_15 = arith.constant dense<0.000000e+00> : vector<16x128xf32>
    %36 = tpu.matmul %34, %35, %cst_15 {dimension_numbers = #tpu.dot_dimension_numbers<[1], [0], [0], [1], [0, 0, 1, 1], [], []>} : vector<16x384xf32>, vector<384x128xf32>, vector<16x128xf32> -> vector<16x128xf32>
    %c0_16 = arith.constant 0 : index
    %c0_17 = arith.constant 0 : index
    %37 = vector.load %arg7[%c0_16, %c0_17] : memref<1x128xf32, #tpu.memory_space<vmem>>, vector<1x128xf32>
    %38 = vector.broadcast %37 : vector<1x128xf32> to vector<16x128xf32>
    %39 = arith.addf %36, %38 : vector<16x128xf32>
    %cst_18 = arith.constant 0.000000e+00 : f32
    %40 = vector.broadcast %cst_18 : f32 to vector<16x128xf32>
    %41 = arith.maximumf %39, %40 : vector<16x128xf32>
    %42 = arith.addf %41, %15 : vector<16x128xf32>
    %cst_19 = arith.constant 0.000000e+00 : f32
    %43 = vector.broadcast %cst_19 : f32 to vector<16x128xf32>
    %44 = arith.maximumf %42, %43 : vector<16x128xf32>
    %c0_20 = arith.constant 0 : index
    %c0_21 = arith.constant 0 : index
    %c0_22 = arith.constant 0 : index
    %45 = vector.load %arg9[%c0_20, %c0_21, %c0_22] : memref<1x16x128xf32, #tpu.memory_space<vmem>>, vector<1x16x128xf32>
    %46 = vector.shape_cast %45 : vector<1x16x128xf32> to vector<16x128xf32>
    %47 = vector.shape_cast %44 : vector<16x128xf32> to vector<1x16x128xf32>
    tpu.vector_store %arg9[%c0_20, %c0_21, %c0_22], %47 {strides = array<i32>} : memref<1x16x128xf32, #tpu.memory_space<vmem>>, vector<1x16x128xf32>,
    return
  }
  func.func @transform_0(%arg0: i32, %arg1: i32) -> (i32, i32, i32) {
    %c1_i32 = arith.constant 1 : i32
    %0 = arith.addi %arg1, %c1_i32 : i32
    %c2_i32 = arith.constant 2 : i32
    %1 = arith.muli %0, %c2_i32 : i32
    %c1_i32_0 = arith.constant 1 : i32
    %2 = arith.subi %1, %c1_i32_0 : i32
    %c0_i32 = arith.constant 0 : i32
    %c0_i32_1 = arith.constant 0 : i32
    return %arg0, %2, %c0_i32 : i32, i32, i32
  }
  func.func @transform_1(%arg0: i32, %arg1: i32) -> (i32, i32, i32) {
    %c1_i32 = arith.constant 1 : i32
    %0 = arith.addi %arg1, %c1_i32 : i32
    %c0_i32 = arith.constant 0 : i32
    %c0_i32_0 = arith.constant 0 : i32
    return %arg0, %0, %c0_i32 : i32, i32, i32
  }
  func.func @transform_2(%arg0: i32, %arg1: i32) -> (i32, i32) {
    %c0_i32 = arith.constant 0 : i32
    %c0_i32_0 = arith.constant 0 : i32
    %c0_i32_1 = arith.constant 0 : i32
    return %c0_i32, %c0_i32_0 : i32, i32
  }
  func.func @transform_3(%arg0: i32, %arg1: i32) -> (i32, i32) {
    %c0_i32 = arith.constant 0 : i32
    %c0_i32_0 = arith.constant 0 : i32
    %c0_i32_1 = arith.constant 0 : i32
    return %c0_i32, %c0_i32_0 : i32, i32
  }
  func.func @transform_4(%arg0: i32, %arg1: i32) -> (i32, i32) {
    %c0_i32 = arith.constant 0 : i32
    %c0_i32_0 = arith.constant 0 : i32
    %c0_i32_1 = arith.constant 0 : i32
    return %c0_i32, %c0_i32_0 : i32, i32
  }
  func.func @transform_5(%arg0: i32, %arg1: i32) -> (i32, i32) {
    %c0_i32 = arith.constant 0 : i32
    %c0_i32_0 = arith.constant 0 : i32
    %c0_i32_1 = arith.constant 0 : i32
    return %c0_i32, %c0_i32_0 : i32, i32
  }
  func.func @transform_6(%arg0: i32, %arg1: i32) -> (i32, i32) {
    %c0_i32 = arith.constant 0 : i32
    %c0_i32_0 = arith.constant 0 : i32
    %c0_i32_1 = arith.constant 0 : i32
    return %c0_i32, %c0_i32_0 : i32, i32
  }
  func.func @transform_7(%arg0: i32, %arg1: i32) -> (i32, i32, i32) {
    %c0_i32 = arith.constant 0 : i32
    %c0_i32_0 = arith.constant 0 : i32
    return %arg0, %arg1, %c0_i32 : i32, i32, i32
  }
}

</mosaic_0001>

<bundles_post_ra>
// kernel: tpu_custom_call.1
= control target key start
LH: loop header
LB: loop body
LE: loop exit
PB: predicated region body
PF: predicated region fallthrough
CT: control target
= control target key end

     0   :  { %s1677_s0 = inlined_call_operand.hbm [shape: f32[2,32,128], index: 0, kind: input, shape index: {}]   ;;  %s1678_s1 = inlined_call_operand.hbm [shape: f32[2,32,128], index: 1, kind: input, shape index: {}]   ;;  %s1679_s2 = inlined_call_operand.hbm [shape: f32[384,256], index: 2, kind: input, shape index: {}]   ;;  %s1680_s3 = inlined_call_operand.vmem [shape: f32[1,128], index: 3, kind: input, shape index: {}]   ;;  %s1681_s4 = inlined_call_operand.hbm [shape: f32[384,128], index: 4, kind: input, shape index: {}]   ;;  %s1682_s5 = inlined_call_operand.vmem [shape: f32[1,128], index: 5, kind: input, shape index: {}]   ;;  %s1683_s6 = inlined_call_operand.vmem [shape: f32[1,128], index: 6, kind: input, shape index: {}]   ;;  %s1684_s7 = inlined_call_operand.hbm [shape: f32[2,16,128], index: 7, kind: output, shape index: {}]  }
   0x1   :  { %1694 = sst [smem:[#allocation23_spill]] %s1679_s2 }
   0x2   :  { %1695 = sst [smem:[#allocation24_spill]] %s1681_s4 }
   0x3   :  { %12 = vsyncpa [#allocation3], 0 }
   0x4   :  { %14 = vsyncpa [#allocation3 + $0x1], 0 }
   0x5   :  { %15 = vsyncpa [#allocation6], 0 }
   0x6   :  { %17 = vsyncpa [#allocation6 + $0x1], 0 }
   0x7   :  { %18 = vsyncpa [#allocation9], 0 }
   0x8   :  { %19 = vsyncpa [#allocation4], 0 }
   0x9   :  { %21 = vsyncpa [#allocation4 + $0x1], 0  ;;  %s1437_s24 = smov 0   ;;  %s1439_s25 = smov 0  }
   0xa   :  { %s1441_s26 = smov 0   ;;  %s1443_s27 = smov 0  }
   0xb   :  { %s1445_s28 = smov 0   ;;  %s1447_s29 = smov 0  }
   0xc LB: > { %1696 = sst [smem:[#allocation16_spill]] %s1367_s24  ;;  %s1468_s30 = sadd.s32 4294967295, %s1387_s29   ;;  %s1387_s29 = sphi %s1447_s29, %s27_s29   ;;  %s1383_s28 = sphi %s1445_s28, %s1718_s28   ;;  %s1379_s27 = sphi %s1443_s27, %s1717_s27   ;;  %s1375_s26 = sphi %s1441_s26, %s1716_s26   ;;  %s1371_s25 = sphi %s1439_s25, %s1720_s25   ;;  %s1367_s24 = sphi %s1437_s24, %s1719_s24  }
   0xd   : > { %1697 = sst [smem:[#allocation17_spill]] %s1375_s26  ;;  %p1030_p0 = scmp.ge.s32.totalorder %s1387_s29, 1 }
   0xe   : > { %1698 = sst [smem:[#allocation18_spill]] %s1383_s28  ;;  %p68_p1 = scmp.eq.s32.totalorder %s1468_s30, 0 }
   0xf   : > { %p241_p2 = scmp.lt.s32.totalorder %s1387_s29, 3  ;;  %s1699_s2 = sld [smem:[#allocation23_spill]] }
  0x10   : > { %s1389_s12 = smov [#allocation7]   ;;  %p1033_p6 = scmp.ge.s32.totalorder %s1387_s29, 2 }
  0x11   : > { %p1476_p3 = pnand %p1030_p0, %p241_p2  ;;  %s254_s13 = sshll.u32 %s1389_s12, 4  ;;  %s255_s13 = int_to_ptr.vmem [resolvable:$true] %s254_s13 }
  0x12   : > { %s1701_s4 = sld [smem:[#allocation24_spill]]  ;;  %s1390_s17 = smov 256  }
  0x13   : > { %p1090_p4 = pneg %p1476_p3  ;;  %s1391_s18 = smov 16  }
  0x14   : > { %s1392_s19 = smov [#allocation8]   ;;  %s1685_s21 = smov 128  }
  0x15   : > { %s252_s10 = sshll.u32 %s1699_s2, 4  ;;  %p1091_p5 = pnand %p1090_p4, %p68_p1  ;;  %s253_s10 = int_to_ptr.hbm [resolvable:$true] %s252_s10 }
  0x16   : > { %s271_s20 = sshll.u32 %s1392_s19, 4  ;;  %s1686_s22 = smov 8   ;;  %s272_s20 = int_to_ptr.vmem [resolvable:$true] %s271_s20 }
  0x17   : > { %1093 = dma.hbm_to_vmem [thread:$0]  (!%p1091_p5), %s253_s10, 12288, %s255_s13, [#allocation6], %s1390_s17, %s1390_s17, %s1391_s18  }
  0x18   : > { %s269_s16 = sshll.u32 %s1701_s4, 4  ;;  %s1029_s23 = sadd.s32 4294967294, %s1387_s29   ;;  %s270_s16 = int_to_ptr.hbm [resolvable:$true] %s269_s16 }
  0x19   : > { %1096 = dma.hbm_to_vmem [thread:$0]  (!%p1091_p5), %s270_s16, 6144, %s272_s20, [#allocation9], %s1685_s21, %s1685_s21, %s1686_s22  }
  0x1a   : > { %s39_s8 = sadd.s32 1, %s1383_s28  ;;  %s54_s9 = sadd.s32 1, %s1375_s26 }
  0x1b   : > { %p41_p7 = scmp.ge.s32.totalorder %s39_s8, 2  ;;  %p61_p8 = scmp.ne.s32.totalorder %s1375_s26, %s1371_s25 }
  0x1c   : > { %p62_p9 = scmp.eq.s32.totalorder %s1387_s29, 0  ;;  %p67_p11 = scmp.ne.s32.totalorder %s1371_s25, %s1367_s24 }
  0x1d   : > { %s1722_s8 = smov (%p41_p7, %s39_s8), 0  ;;  %p228_p12 = scmp.eq.s32.totalorder %s1468_s30, 1 }
  0x1e   : > { %1702 = sst [smem:[#allocation19_spill]] %s1722_s8  ;;  %p1499_p10 = por %p62_p9, %p61_p8 }
  0x1f   : > { %s49_s12 = ssub.s32 %s1383_s28, %s1722_s8  ;;  %p1510_p0 = por %p68_p1, %p67_p11 }
  0x20   : > { %p52_p13 = scmp.eq.s32.totalorder %s49_s12, 0  ;;  %p1514_p2 = por %p228_p12, %p61_p8 }
  0x21   : > { %p234_p4 = scmp.eq.s32.totalorder %s1029_s23, 1  ;;  %p1110_p7 = scmp.lt.s32.totalorder %s1387_s29, 2 }
  0x22   : > { %s1705_s14 = scalar_select %p1514_p2, 1, 0 }
  0x23   : > { %s1519_s15 = scalar_select %p52_p13, %s1375_s26, %s54_s9  }
  0x24   : > { %1706 = sst [smem:[#allocation20_spill]] %s1705_s14  ;;  %p1521_p5 = por %p234_p4, %p67_p11 }
  0x25   : > { %1707 = sst [smem:[#allocation21_spill]] %s1519_s15  ;;  %s291_s17 = sand.u32 1, %s1375_s26  }
  0x26   : > { %s1708_s16 = scalar_select %p1521_p5, 1, 0 }
  0x27   : > { %s1059_s18 = sshll.u32 %s1383_s28, 5  ;;  %s1034_s19 = sshll.u32 %s291_s17, 3 }
  0x28   : > { %1709 = sst [smem:[#allocation22_spill]] %s1708_s16  ;;  %s1056_s20 = sadd.s32 8, %s1059_s18 }
  0x29   : > { %s304_s22 = scalar_lea.hbm %s1677_s0, %s1056_s20  ;;  %s295_s2 = scalar_lea.vmem [#allocation2], %s1034_s19 }
  0x2a   : > { %s308_s4 = sshll.u32 %s295_s2, 4  ;;  %s306_s8 = sshll.u32 %s304_s22, 4  ;;  %s309_s4 = int_to_ptr.vmem [resolvable:$true] %s308_s4  ;;  %s307_s8 = int_to_ptr.hbm [resolvable:$true] %s306_s8 }
  0x2b   : > { %p1098_p8 = pnand %p1110_p7, %p1499_p10  ;;  %s1037_s23 = sshll.u32 %s291_s17, 4 }
  0x2c   : > { %s941_s26 = scalar_lea.hbm %s1678_s1, %s1059_s18  ;;  %s292_s28 = scalar_lea.sflag [#allocation3], %s291_s17 }
  0x2d   : > { %1100 = dma.hbm_to_vmem [thread:$0]  (!%p1098_p8), %s307_s8, 128, %s309_s4, %s292_s28  }
  0x2e   : > { %s942_s16 = scalar_lea.hbm %s941_s26, 16  ;;  %s319_s24 = scalar_lea.vmem [#allocation5], %s1037_s23 }
  0x2f   : > { %s330_s14 = sshll.u32 %s319_s24, 4  ;;  %s328_s21 = sshll.u32 %s942_s16, 4  ;;  %s331_s14 = int_to_ptr.vmem [resolvable:$true] %s330_s14  ;;  %s329_s21 = int_to_ptr.hbm [resolvable:$true] %s328_s21 }
  0x30   : > { %s315_s19 = sand.u32 1, %s1387_s29   ;;  %s1710_s22 = smov 8  }
  0x31   : > { %s316_s2 = scalar_lea.sflag [#allocation6], %s315_s19  ;;  %s1711_s20 = smov 128  }
  0x32   : > { %1103 = dma.hbm_to_vmem [thread:$0]  (!%p1098_p8), %s329_s21, 256, %s331_s14, %s316_s2, %s1711_s20, %s1711_s20, %s1710_s22  }
  0x33   : > { %342 = sbr.rel (%p1476_p3) target bundleno = 399 (0x18f), region = 48  ;;  %s1543_s10 = sand.u32 (!%p1476_p3), 1, %s1371_s25  }
  0x34   : > { %s1041_s4 = sshll.u32 (!%p1476_p3), %s1543_s10, 3  ;;  %s345_s24 = scalar_lea.sflag (!%p1476_p3), [#allocation3], %s1543_s10 }
  0x35   : > { %s1547_s26 = scalar_lea.vmem (!%p1476_p3), [#allocation2], %s1041_s4 }
  0x38   : > { %1346 = dma.done.wait (%p1510_p0), %s345_s24, 128  }
  0x39   : > { %1348 = vsyncadd (%p1510_p0), %s345_s24, 4294967168  ;;  %s354_s28 = sand.u32 1, %s1468_s30   ;;  %s1042_s11 = sshll.u32 %s1543_s10, 4 }
  0x3a   : > { %s355_s8 = scalar_lea.sflag [#allocation6], %s354_s28  ;;  %s1557_s14 = scalar_lea.vmem [#allocation5], %s1042_s11 }
  0x3b   : > { %1350 = dma.done.wait (%p1510_p0), %s355_s8, 256  }
  0x3c   : > { %1352 = vsyncadd (%p1510_p0), %s355_s8, 4294967040 }
  0x3d   : > { %1354 = dma.done.wait (%p68_p1), [#allocation6], 12288  }
  0x3e   : > { %1356 = vsyncadd (%p68_p1), [#allocation6], 4294955008 }
  0x3f   : > { %1358 = dma.done.wait (%p68_p1), [#allocation9], 6144  }
  0x40   : > { %1360 = vsyncadd (%p68_p1), [#allocation9], 4294961152  ;;  %v529_v0 = vld [vmem:[#allocation7 + $0x2f0] sm:$0xff]  ;;  %v527_v1 = vld [vmem:[#allocation7 + $0x2e0] sm:$0xff]  ;;  %vm426_vm0 = vcmask 1043456   ;;  %vm417_vm1 = vcmask 1045504  }
  0x41   : > { %v465_v2 = vld [vmem:[#allocation7 + $0xf0] sm:$0xff]  ;;  %583 = vmatpush.msra.mxu2 %v529_v0  ;;  %v463_v4 = vld [vmem:[#allocation7 + $0xe0] sm:$0xff]  ;;  %v466_v30 = vld [vmem:[#allocation7 + $0xf8] sm:$0xff]  ;;  %s1058_s12 = sshll.u32 %s1379_s27, 4  ;;  %s404_s19 = scalar_lea.vmem [#allocation10], %s1042_s11 }
  0x42   : > { %531 = vmatpush.msra.mxu0 %v465_v2  ;;  %v497_v3 = vld [vmem:[#allocation7 + $0x1f0] sm:$0xff]  ;;  %v495_v6 = vld [vmem:[#allocation7 + $0x1e0] sm:$0xff]  ;;  %v464_v31 = vld [vmem:[#allocation7 + $0xe8] sm:$0xff]  ;;  %609 = vmatpush.msra.mxu3 %v466_v30  ;;  %s892_s21 = scalar_lea.hbm %s1684_s7, %s1058_s12  ;;  %s893_s22 = sshll.u32 %s404_s19, 4  ;;  %s894_s22 = int_to_ptr.vmem [resolvable:$true] %s893_s22 }
  0x43   : > { %557 = vmatpush.msra.mxu1 %v497_v3  ;;  %v525_v5 = vld [vmem:[#allocation7 + $0x2d0] sm:$0xff]  ;;  %584 = vmatpush.msra.mxu2 %v527_v1  ;;  %v523_v9 = vld [vmem:[#allocation7 + $0x2c0] sm:$0xff]  ;;  %v462_v35 = vld [vmem:[#allocation7 + $0xd8] sm:$0xff]  ;;  %s895_s20 = sshll.u32 %s892_s21, 4  ;;  %s879_s27 = scalar_lea.sflag [#allocation4], %s1543_s10  ;;  %s896_s20 = int_to_ptr.hbm [resolvable:$true] %s895_s20 }
  0x44   : > { %v461_v7 = vld [vmem:[#allocation7 + $0xd0] sm:$0xff]  ;;  %532 = vmatpush.msra.mxu0 %v463_v4  ;;  %v459_v10 = vld [vmem:[#allocation7 + $0xc0] sm:$0xff]  ;;  %610 = vmatpush.msra.mxu3 %v464_v31  ;;  %v460_v40 = vld [vmem:[#allocation7 + $0xc8] sm:$0xff]  ;;  %s1307_s4 = sshra.s32 %s896_s20, 4  ;;  %s1313_s11 = scalar_lea.hbm %s1684_s7, 32  ;;  %s1308_s4 = int_to_ptr.hbm [resolvable:$true] %s1307_s4 }
  0x45   : > { %v493_v8 = vld [vmem:[#allocation7 + $0x1d0] sm:$0xff]  ;;  %558 = vmatpush.msra.mxu1 %v495_v6  ;;  %585 = vmatpush.msra.mxu2 %v525_v5  ;;  %v491_v11 = vld [vmem:[#allocation7 + $0x1c0] sm:$0xff]  ;;  %v458_v45 = vld [vmem:[#allocation7 + $0xb8] sm:$0xff]  ;;  %s1309_s24 = scalar_lea.hbm %s1308_s4, 16  ;;  %p1314_p10 = scmp.lt.s32.totalorder %s1308_s4, %s1684_s7 }
  0x46   : > { %533 = vmatpush.msra.mxu0 %v461_v7  ;;  %v521_v12 = vld [vmem:[#allocation7 + $0x2b0] sm:$0xff]  ;;  %v519_v15 = vld [vmem:[#allocation7 + $0x2a0] sm:$0xff]  ;;  %611 = vmatpush.msra.mxu3 %v462_v35  ;;  %v456_v51 = vld [vmem:[#allocation7 + $0xa8] sm:$0xff]  ;;  %p1310_p1 = scmp.ne.s32.totalorder %s1308_s4, %s1309_s24  ;;  %p1315_p11 = scmp.lt.s32.totalorder %s1313_s11, %s1309_s24 }
  0x47   : > { %559 = vmatpush.msra.mxu1 %v493_v8  ;;  %v457_v13 = vld [vmem:[#allocation7 + $0xb0] sm:$0xff]  ;;  %586 = vmatpush.msra.mxu2 %v523_v9  ;;  %v455_v16 = vld [vmem:[#allocation7 + $0xa0] sm:$0xff]  ;;  %v454_v57 = vld [vmem:[#allocation7 + $0x98] sm:$0xff] }
  0x48   : > { %534 = vmatpush.msra.mxu0 %v459_v10  ;;  %v489_v14 = vld [vmem:[#allocation7 + $0x1b0] sm:$0xff]  ;;  %v487_v17 = vld [vmem:[#allocation7 + $0x1a0] sm:$0xff]  ;;  %612 = vmatpush.msra.mxu3 %v460_v40  ;;  %v1588_v63 = vld [vmem:[%s1557_s14 + $0x8] sm:$0xff]  ;;  %p1311_p3 = pnand %p1310_p1, %p1514_p2  ;;  %p1316_p12 = por %p1315_p11, %p1314_p10 }
  0x49   : > { %560 = vmatpush.msra.mxu1 %v491_v11  ;;  %587 = vmatpush.msra.mxu2 %v521_v12  ;;  %v517_v18 = vld [vmem:[#allocation7 + $0x290] sm:$0xff]  ;;  %v515_v21 = vld [vmem:[#allocation7 + $0x280] sm:$0xff]  ;;  %v498_v0 = vld [vmem:[#allocation7 + $0x1f8] sm:$0xff]  ;;  %v1594_v4 = vrot.slane %v1588_v63, 4  ;;  %v1597_v7 = vrot.slane %v1588_v63, 2 }
  0x4a   : > { %535 = vmatpush.msra.mxu0 %v457_v13  ;;  %v453_v19 = vld [vmem:[#allocation7 + $0x90] sm:$0xff]  ;;  %v451_v22 = vld [vmem:[#allocation7 + $0x80] sm:$0xff]  ;;  %613 = vmatpush.msra.mxu3 %v458_v45  ;;  %v530_v1 = vld [vmem:[#allocation7 + $0x2f8] sm:$0xff]  ;;  %p1312_p9 = pneg %p1311_p3 }
  0x4b   : > { %561 = vmatpush.msra.mxu1 %v489_v14  ;;  %588 = vmatpush.msra.mxu2 %v519_v15  ;;  %v485_v20 = vld [vmem:[#allocation7 + $0x190] sm:$0xff]  ;;  %v483_v23 = vld [vmem:[#allocation7 + $0x180] sm:$0xff]  ;;  %v754_v2 = vld [vmem:[#allocation8 + $0x78] sm:$0xff] }
  0x4c   : > { %536 = vmatpush.msra.mxu0 %v455_v16  ;;  %v513_v24 = vld [vmem:[#allocation7 + $0x270] sm:$0xff]  ;;  %v511_v27 = vld [vmem:[#allocation7 + $0x260] sm:$0xff]  ;;  %614 = vmatpush.msra.mxu3 %v456_v51  ;;  %v452_v3 = vld [vmem:[#allocation7 + $0x88] sm:$0xff]  ;;  %p1317_p13 = pnand %p1316_p12, %p1312_p9 }
  0x4d   : > { %562 = vmatpush.msra.mxu1 %v487_v17  ;;  %589 = vmatpush.msra.mxu2 %v517_v18  ;;  %v449_v25 = vld [vmem:[#allocation7 + $0x70] sm:$0xff]  ;;  %v447_v28 = vld [vmem:[#allocation7 + $0x60] sm:$0xff]  ;;  %v496_v5 = vld [vmem:[#allocation7 + $0x1e8] sm:$0xff] }
  0x4e   : > { %537 = vmatpush.msra.mxu0 %v453_v19  ;;  %v481_v26 = vld [vmem:[#allocation7 + $0x170] sm:$0xff]  ;;  %v479_v29 = vld [vmem:[#allocation7 + $0x160] sm:$0xff]  ;;  %615 = vmatpush.msra.mxu3 %v454_v57  ;;  %v528_v6 = vld [vmem:[#allocation7 + $0x2e8] sm:$0xff] }
  0x4f   : > { %563 = vmatpush.msra.mxu1 %v485_v20  ;;  %590 = vmatpush.msra.mxu2 %v515_v21  ;;  %v509_v32 = vld [vmem:[#allocation7 + $0x250] sm:$0xff]  ;;  %v507_v36 = vld [vmem:[#allocation7 + $0x240] sm:$0xff]  ;;  %v450_v9 = vld [vmem:[#allocation7 + $0x78] sm:$0xff] }
  0x50   : > { %538 = vmatpush.msra.mxu0 %v451_v22  ;;  %v445_v33 = vld [vmem:[#allocation7 + $0x50] sm:$0xff]  ;;  %v443_v37 = vld [vmem:[#allocation7 + $0x40] sm:$0xff]  ;;  %v494_v10 = vld [vmem:[#allocation7 + $0x1d8] sm:$0xff]  ;;  %616 = vmatpush.msra.mxu3 %v452_v3 }
  0x51   : > { %564 = vmatpush.msra.mxu1 %v483_v23  ;;  %591 = vmatpush.msra.mxu2 %v513_v24  ;;  %v477_v34 = vld [vmem:[#allocation7 + $0x150] sm:$0xff]  ;;  %v475_v39 = vld [vmem:[#allocation7 + $0x140] sm:$0xff]  ;;  %v526_v11 = vld [vmem:[#allocation7 + $0x2d8] sm:$0xff] }
  0x52   : > { %539 = vmatpush.msra.mxu0 %v449_v25  ;;  %v505_v38 = vld [vmem:[#allocation7 + $0x230] sm:$0xff]  ;;  %v503_v46 = vld [vmem:[#allocation7 + $0x220] sm:$0xff]  ;;  %v752_v12 = vld [vmem:[#allocation8 + $0x68] sm:$0xff]  ;;  %617 = vmatpush.msra.mxu3 %v450_v9 }
  0x53   : > { %565 = vmatpush.msra.mxu1 %v481_v26  ;;  %592 = vmatpush.msra.mxu2 %v511_v27  ;;  %v441_v41 = vld [vmem:[#allocation7 + $0x30] sm:$0xff]  ;;  %v439_v47 = vld [vmem:[#allocation7 + $0x20] sm:$0xff]  ;;  %v448_v13 = vld [vmem:[#allocation7 + $0x68] sm:$0xff] }
  0x54   : > { %540 = vmatpush.msra.mxu0 %v447_v28  ;;  %v1572_v42 = vld [vmem:[%s1547_s26] sm:$0xff]  ;;  %v1575_v43 = vld [vmem:[%s1557_s14] sm:$0xff]  ;;  %v492_v15 = vld [vmem:[#allocation7 + $0x1c8] sm:$0xff]  ;;  %618 = vmatpush.msra.mxu3 %v448_v13 }
  0x55   : > { %566 = vmatpush.msra.mxu1 %v479_v29  ;;  %593 = vmatpush.msra.mxu2 %v509_v32  ;;  %v473_v44 = vld [vmem:[#allocation7 + $0x130] sm:$0xff]  ;;  %v471_v48 = vld [vmem:[#allocation7 + $0x120] sm:$0xff]  ;;  %v427_v49 = vrot.slane %v1572_v42, 4  ;;  %v428_v50 = vrot.slane %v1575_v43, 4  ;;  %v418_v54 = vrot.slane %v1572_v42, 2  ;;  %v419_v55 = vrot.slane %v1575_v43, 2 }
  0x56   : > { %541 = vmatpush.msra.mxu0 %v445_v33  ;;  %v501_v52 = vld [vmem:[#allocation7 + $0x210] sm:$0xff]  ;;  %v499_v58 = vld [vmem:[#allocation7 + $0x200] sm:$0xff]  ;;  %v490_v17 = vld [vmem:[#allocation7 + $0x1b8] sm:$0xff] }
  0x57   : > { %567 = vmatpush.msra.mxu1 %v477_v34  ;;  %594 = vmatpush.msra.mxu2 %v507_v36  ;;  %v437_v53 = vld [vmem:[#allocation7 + $0x10] sm:$0xff]  ;;  %v435_v59 = vld [vmem:[#allocation7] sm:$0xff]  ;;  %v1582_v60 = vsel %vm426_vm0, %v427_v49, %v428_v50  ;;  %v1585_v62 = vsel %vm417_vm1, %v418_v54, %v419_v55  ;;  %v1601_v14 = vsel %vm426_vm0, %v428_v50, %v1594_v4  ;;  %v524_v18 = vld [vmem:[#allocation7 + $0x2c8] sm:$0xff] }
  0x58   : > { %542 = vmatpush.msra.mxu0 %v443_v37  ;;  %v469_v56 = vld [vmem:[#allocation7 + $0x110] sm:$0xff]  ;;  %v467_v61 = vld [vmem:[#allocation7 + $0x100] sm:$0xff]  ;;  %v1605_v16 = vsel %vm417_vm1, %v419_v55, %v1597_v7  ;;  %v446_v20 = vld [vmem:[#allocation7 + $0x58] sm:$0xff] }
  0x59   : > { %568 = vmatpush.msra.mxu1 %v475_v39  ;;  %595 = vmatpush.msra.mxu2 %v505_v38  ;;  %v753_v8 = vld [vmem:[#allocation8 + $0x70] sm:$0xff]  ;;  %v751_v19 = vld [vmem:[#allocation8 + $0x60] sm:$0xff]  ;;  %v488_v21 = vld [vmem:[#allocation7 + $0x1a8] sm:$0xff] }
  0x5a   : > { %543 = vmatpush.msra.mxu0 %v441_v41  ;;  %v522_v22 = vld [vmem:[#allocation7 + $0x2b8] sm:$0xff]  ;;  %v444_v24 = vld [vmem:[#allocation7 + $0x48] sm:$0xff]  ;;  %619 = vmatpush.msra.mxu3 %v446_v20  ;;  %v749_v27 = vld [vmem:[#allocation8 + $0x50] sm:$0xff] }
  0x5b   : > { %569 = vmatpush.msra.mxu1 %v473_v44  ;;  %596 = vmatpush.msra.mxu2 %v503_v46  ;;  %v750_v23 = vld [vmem:[#allocation8 + $0x58] sm:$0xff]  ;;  %v520_v26 = vld [vmem:[#allocation7 + $0x2a8] sm:$0xff]  ;;  %v747_v36 = vld [vmem:[#allocation8 + $0x40] sm:$0xff] }
  0x5c   : > { %544 = vmatpush.msra.mxu0 %v439_v47  ;;  %v486_v25 = vld [vmem:[#allocation7 + $0x198] sm:$0xff]  ;;  %v484_v29 = vld [vmem:[#allocation7 + $0x188] sm:$0xff]  ;;  %620 = vmatpush.msra.mxu3 %v444_v24  ;;  %v745_v46 = vld [vmem:[#allocation8 + $0x30] sm:$0xff] }
  0x5d   : > { %570 = vmatpush.msra.mxu1 %v471_v48  ;;  %597 = vmatpush.msra.mxu2 %v501_v52  ;;  %v442_v28 = vld [vmem:[#allocation7 + $0x38] sm:$0xff]  ;;  %v748_v32 = vld [vmem:[#allocation8 + $0x48] sm:$0xff]  ;;  %v769_v54 = vld [vmem:[#allocation8 + $0xf0] sm:$0xff] }
  0x5e   : > { %545 = vmatpush.msra.mxu0 %v437_v53  ;;  %v482_v30 = vld [vmem:[#allocation7 + $0x178] sm:$0xff]  ;;  %621 = vmatpush.msra.mxu3 %v442_v28  ;;  %v440_v33 = vld [vmem:[#allocation7 + $0x28] sm:$0xff]  ;;  %v743_v53 = vld [vmem:[#allocation8 + $0x20] sm:$0xff] }
  0x5f   : > { %571 = vmatpush.msra.mxu1 %v469_v56  ;;  %598 = vmatpush.msra.mxu2 %v499_v58  ;;  %v518_v31 = vld [vmem:[#allocation7 + $0x298] sm:$0xff]  ;;  %v480_v34 = vld [vmem:[#allocation7 + $0x168] sm:$0xff]  ;;  %v739_v9 = vld [vmem:[#allocation8] sm:$0xff] }
  0x60   : > { %546 = vmatpush.msra.mxu0 %v435_v59  ;;  %599 = vmatmul.f32.vlgmr.msra.gmra.mxu2 %v1582_v60  ;;  %v516_v35 = vld [vmem:[#allocation7 + $0x288] sm:$0xff]  ;;  %v438_v37 = vld [vmem:[#allocation7 + $0x18] sm:$0xff]  ;;  %v765_v13 = vld [vmem:[#allocation8 + $0xd0] sm:$0xff] }
  0x61   : > { %572 = vmatpush.msra.mxu1 %v467_v61  ;;  %547 = vmatmul.f32.vlgmr.msra.gmra.mxu0 %v1572_v42  ;;  %v478_v38 = vld [vmem:[#allocation7 + $0x158] sm:$0xff]  ;;  %v436_v41 = vld [vmem:[#allocation7 + $0x8] sm:$0xff]  ;;  %v775_v20 = vld [vmem:[#allocation8 + $0x120] sm:$0xff] }
  0x62   : > { %573 = vmatmul.f32.vlgmr.msra.gmra.mxu1 %v1585_v62  ;;  %635 = vmatpush.msrb.mxu0 %v498_v0  ;;  %v514_v39 = vld [vmem:[#allocation7 + $0x278] sm:$0xff]  ;;  %v476_v44 = vld [vmem:[#allocation7 + $0x148] sm:$0xff]  ;;  %v773_v24 = vld [vmem:[#allocation8 + $0x110] sm:$0xff] }
  0x63   : > { %661 = vmatpush.msrb.mxu1 %v530_v1  ;;  %791 = vmatpush.msrb.mxu2 %v754_v2  ;;  %v746_v40 = vld [vmem:[#allocation8 + $0x38] sm:$0xff]  ;;  %v512_v45 = vld [vmem:[#allocation7 + $0x268] sm:$0xff]  ;;  %v785_v2 = vld [vmem:[#allocation8 + $0x170] sm:$0xff] }
  0x64   : > { %636 = vmatpush.msrb.mxu0 %v496_v5  ;;  %622 = vmatpush.msra.mxu3 %v440_v33  ;;  %v474_v47 = vld [vmem:[#allocation7 + $0x138] sm:$0xff]  ;;  %v744_v49 = vld [vmem:[#allocation8 + $0x28] sm:$0xff]  ;;  %v771_v28 = vld [vmem:[#allocation8 + $0x100] sm:$0xff] }
  0x65   : > { %662 = vmatpush.msrb.mxu1 %v528_v6  ;;  %792 = vmatpush.msrb.mxu2 %v753_v8  ;;  %v510_v48 = vld [vmem:[#allocation7 + $0x258] sm:$0xff]  ;;  %v472_v51 = vld [vmem:[#allocation7 + $0x128] sm:$0xff]  ;;  %v767_v6 = vld [vmem:[#allocation8 + $0xe0] sm:$0xff] }
  0x66   : > { %637 = vmatpush.msrb.mxu0 %v494_v10  ;;  %623 = vmatpush.msra.mxu3 %v438_v37  ;;  %v770_v50 = vld [vmem:[#allocation8 + $0xf8] sm:$0xff]  ;;  %v508_v52 = vld [vmem:[#allocation7 + $0x248] sm:$0xff]  ;;  %v783_v10 = vld [vmem:[#allocation8 + $0x160] sm:$0xff] }
  0x67   : > { %663 = vmatpush.msrb.mxu1 %v526_v11  ;;  %793 = vmatpush.msrb.mxu2 %v752_v12  ;;  %v470_v55 = vld [vmem:[#allocation7 + $0x118] sm:$0xff]  ;;  %v768_v58 = vld [vmem:[#allocation8 + $0xe8] sm:$0xff] }
  0x68   : > { %602 = vmatmul.f32.gmra.mxu2 %v1601_v14  ;;  %638 = vmatpush.msrb.mxu0 %v492_v15  ;;  %v506_v56 = vld [vmem:[#allocation7 + $0x238] sm:$0xff]  ;;  %v468_v59 = vld [vmem:[#allocation7 + $0x108] sm:$0xff]  ;;  %v781_v15 = vld [vmem:[#allocation8 + $0x150] sm:$0xff] }
  0x69   : > { %550 = vmatmul.f32.gmra.mxu0 %v1575_v43  ;;  %664 = vmatpush.msrb.mxu1 %v524_v18  ;;  %v742_v57 = vld [vmem:[#allocation8 + $0x18] sm:$0xff]  ;;  %v504_v61 = vld [vmem:[#allocation7 + $0x228] sm:$0xff]  ;;  %v777_v18 = vld [vmem:[#allocation8 + $0x130] sm:$0xff] }
  0x6a   : > { %576 = vmatmul.f32.gmra.mxu1 %v1605_v16  ;;  %639 = vmatpush.msrb.mxu0 %v490_v17  ;;  %v786_v0 = vld [vmem:[#allocation8 + $0x178] sm:$0xff]  ;;  %v740_v3 = vld [vmem:[#allocation8 + $0x8] sm:$0xff] }
  0x6b   : > { %794 = vmatpush.msrb.mxu2 %v751_v19  ;;  %665 = vmatpush.msrb.mxu1 %v522_v22  ;;  %v502_v1 = vld [vmem:[#allocation7 + $0x218] sm:$0xff]  ;;  %v500_v5 = vld [vmem:[#allocation7 + $0x208] sm:$0xff]  ;;  %v759_v19 = vld [vmem:[#allocation8 + $0xa0] sm:$0xff] }
  0x6c   : > { %640 = vmatpush.msrb.mxu0 %v488_v21  ;;  %624 = vmatpush.msra.mxu3 %v436_v41  ;;  %v784_v8 = vld [vmem:[#allocation8 + $0x168] sm:$0xff]  ;;  %v766_v11 = vld [vmem:[#allocation8 + $0xd8] sm:$0xff] }
  0x6d   : > { %795 = vmatpush.msrb.mxu2 %v750_v23  ;;  %666 = vmatpush.msrb.mxu1 %v520_v26  ;;  %v782_v12 = vld [vmem:[#allocation8 + $0x158] sm:$0xff]  ;;  %v757_v23 = vld [vmem:[#allocation8 + $0x90] sm:$0xff]  ;;  %v772_v26 = vld [vmem:[#allocation8 + $0x108] sm:$0xff] }
  0x6e   : > { %641 = vmatpush.msrb.mxu0 %v486_v25  ;;  %625 = vmatmul.f32.vlgmr.msra.gmra.mxu3 %v1572_v42  ;;  %v741_v42 = vld [vmem:[#allocation8 + $0x10] sm:$0xff]  ;;  %v762_v17 = vld [vmem:[#allocation8 + $0xb8] sm:$0xff]  ;;  %v756_v25 = vld [vmem:[#allocation8 + $0x88] sm:$0xff] }
  0x6f   : > { %796 = vmatpush.msrb.mxu2 %v749_v27  ;;  %667 = vmatpush.msrb.mxu1 %v518_v31  ;;  %v758_v21 = vld [vmem:[#allocation8 + $0x98] sm:$0xff]  ;;  %v755_v27 = vld [vmem:[#allocation8 + $0x80] sm:$0xff] }
  0x70   : > { %605 = vmatmul.f32.gmra.mxu2 %v1594_v4  ;;  %642 = vmatpush.msrb.mxu0 %v484_v29  ;;  %v774_v22 = vld [vmem:[#allocation8 + $0x118] sm:$0xff]  ;;  %v704_v29 = vlaneseq }
  0x71   : > { %553 = vmatmul.f32.gmra.mxu0 %v1588_v63  ;;  %797 = vmatpush.msrb.mxu2 %v748_v32 }
  0x72   : > { %579 = vmatmul.f32.gmra.mxu1 %v1597_v7  ;;  %643 = vmatpush.msrb.mxu0 %v482_v30  ;;  %v705_v32 = vshrl.u32 %v704_v29, 7 }
  0x73   : > { %668 = vmatpush.msrb.mxu1 %v516_v35  ;;  %798 = vmatpush.msrb.mxu2 %v747_v36 }
  0x74   : > { %644 = vmatpush.msrb.mxu0 %v480_v34  ;;  %814 = vmatpush.msrb.mxu3 %v770_v50  ;;  %v1170_v34 = vld [vmem:[%s1680_s3] ss:$0 sm:$0xff]  ;;  %v1046_v36 = vadd.s32 4294967292, %v705_v32 }
  0x75   : > { %669 = vmatpush.msrb.mxu1 %v514_v39  ;;  %799 = vmatpush.msrb.mxu2 %v746_v40 }
  0x76   : > { %645 = vmatpush.msrb.mxu0 %v478_v38  ;;  %815 = vmatpush.msrb.mxu3 %v769_v54  ;;  %vm716_vm2 = vcmp.ge.s32.totalorder %v1046_v36, 0 }
  0x77   : > { %670 = vmatpush.msrb.mxu1 %v512_v45  ;;  %800 = vmatpush.msrb.mxu2 %v745_v46 }
  0x78   : > { %646 = vmatpush.msrb.mxu0 %v476_v44  ;;  %816 = vmatpush.msrb.mxu3 %v768_v58 }
  0x79   : > { %671 = vmatpush.msrb.mxu1 %v510_v48  ;;  %801 = vmatpush.msrb.mxu2 %v744_v49 }
  0x7a   : > { %647 = vmatpush.msrb.mxu0 %v474_v47  ;;  %817 = vmatpush.msrb.mxu3 %v767_v6 }
  0x7b   : > { %672 = vmatpush.msrb.mxu1 %v508_v52  ;;  %802 = vmatpush.msrb.mxu2 %v743_v53 }
  0x7c   : > { %648 = vmatpush.msrb.mxu0 %v472_v51  ;;  %628 = vmatmul.f32.gmra.mxu3 %v1575_v43  ;;  %v764_v43 = vld [vmem:[#allocation8 + $0xc8] sm:$0xff] }
  0x7d   : > { %673 = vmatpush.msrb.mxu1 %v506_v56  ;;  %803 = vmatpush.msrb.mxu2 %v742_v57 }
  0x7e   : > { %649 = vmatpush.msrb.mxu0 %v470_v55  ;;  %818 = vmatpush.msrb.mxu3 %v766_v11 }
  0x7f   : > { %674 = vmatpush.msrb.mxu1 %v504_v61  ;;  %804 = vmatpush.msrb.mxu2 %v741_v42 }
  0x80   : > { %650 = vmatpush.msrb.mxu0 %v468_v59  ;;  %819 = vmatpush.msrb.mxu3 %v765_v13 }
  0x81   : > { %675 = vmatpush.msrb.mxu1 %v502_v1  ;;  %651 = vmatmul.f32.vlgmr.msrb.gmra.mxu0 %v1585_v62  ;;  %v763_v62 = vld [vmem:[#allocation8 + $0xc0] sm:$0xff] }
  0x82   : > { %837 = vmatpush.msra.mxu0 %v786_v0  ;;  %805 = vmatpush.msrb.mxu2 %v740_v3 }
  0x83   : > { %676 = vmatpush.msrb.mxu1 %v500_v5  ;;  %820 = vmatpush.msrb.mxu3 %v764_v43 }
  0x84   : > { %838 = vmatpush.msra.mxu0 %v785_v2  ;;  %677 = vmatmul.f32.vlgmr.msrb.gmra.mxu1 %v1582_v60  ;;  %v780_v60 = vld [vmem:[#allocation8 + $0x148] sm:$0xff] }
  0x85   : > { %806 = vmatpush.msrb.mxu2 %v739_v9  ;;  %631 = vmatmul.f32.gmra.mxu3 %v1588_v63  ;;  %v778_v63 = vld [vmem:[#allocation8 + $0x138] sm:$0xff] }
  0x86   : > { %839 = vmatpush.msra.mxu0 %v784_v8  ;;  %821 = vmatpush.msrb.mxu3 %v763_v62 }
  0x87   : > { %1060 = vmatpush.msra.mxu2 %v786_v0 }
  0x88   : > { %840 = vmatpush.msra.mxu0 %v783_v10  ;;  %822 = vmatpush.msrb.mxu3 %v762_v17 }
  0x89   : > { %1061 = vmatpush.msra.mxu2 %v785_v2  ;;  %654 = vmatmul.f32.gmra.mxu0 %v1605_v16  ;;  %v779_v16 = vld [vmem:[#allocation8 + $0x140] sm:$0xff] }
  0x8a   : > { %841 = vmatpush.msra.mxu0 %v782_v12 }
  0x8b   : > { %1062 = vmatpush.msra.mxu2 %v784_v8 }
  0x8c   : > { %842 = vmatpush.msra.mxu0 %v781_v15  ;;  %680 = vmatmul.f32.gmra.mxu1 %v1601_v14  ;;  %v761_v14 = vld [vmem:[#allocation8 + $0xb0] sm:$0xff] }
  0x8d   : > { %1063 = vmatpush.msra.mxu2 %v783_v10  ;;  %823 = vmatpush.msrb.mxu3 %v761_v14  ;;  %v1172_v14 = vld [vmem:[%s1682_s5] ss:$0 sm:$0xff] }
  0x8e   : > { %843 = vmatpush.msra.mxu0 %v780_v60 }
  0x8f   : > { %1064 = vmatpush.msra.mxu2 %v782_v12 }
  0x90   : > { %844 = vmatpush.msra.mxu0 %v779_v16 }
  0x91   : > { %1065 = vmatpush.msra.mxu2 %v781_v15  ;;  %657 = vmatmul.f32.gmra.mxu0 %v1597_v7  ;;  %v776_v7 = vld [vmem:[#allocation8 + $0x128] sm:$0xff] }
  0x92   : > { %845 = vmatpush.msra.mxu0 %v778_v63 }
  0x93   : > { %1066 = vmatpush.msra.mxu2 %v780_v60 }
  0x94   : > { %683 = vmatmul.f32.gmra.mxu1 %v1594_v4  ;;  %846 = vmatpush.msra.mxu0 %v777_v18  ;;  %v760_v4 = vld [vmem:[#allocation8 + $0xa8] sm:$0xff] }
  0x95   : > { %1067 = vmatpush.msra.mxu2 %v779_v16  ;;  %824 = vmatpush.msrb.mxu3 %v760_v4  ;;  %v1171_v16 = vld [vmem:[%s1683_s6] ss:$0 sm:$0xff] }
  0x96   : > { %847 = vmatpush.msra.mxu0 %v776_v7 }
  0x97   : > { %1068 = vmatpush.msra.mxu2 %v778_v63  ;;  %825 = vmatpush.msrb.mxu3 %v759_v19 }
  0x98   : > { %848 = vmatpush.msra.mxu0 %v775_v20 }
  0x99   : > { %1069 = vmatpush.msra.mxu2 %v777_v18  ;;  %826 = vmatpush.msrb.mxu3 %v758_v21 }
  0x9a   : > { %849 = vmatpush.msra.mxu0 %v774_v22 }
  0x9b   : > { %1070 = vmatpush.msra.mxu2 %v776_v7  ;;  %827 = vmatpush.msrb.mxu3 %v757_v23 }
  0x9c   : > { %850 = vmatpush.msra.mxu0 %v773_v24 }
  0x9d   : > { %1071 = vmatpush.msra.mxu2 %v775_v20  ;;  %828 = vmatpush.msrb.mxu3 %v756_v25 }
  0x9e   : > { %851 = vmatpush.msra.mxu0 %v772_v26 }
  0x9f   : > { %1072 = vmatpush.msra.mxu2 %v774_v22  ;;  %829 = vmatpush.msrb.mxu3 %v755_v27 }
  0xa0   : > { %852 = vmatpush.msra.mxu0 %v771_v28 }
  0xa1   : > { %1073 = vmatpush.msra.mxu2 %v773_v24 }
  0xa3   : > { %1074 = vmatpush.msra.mxu2 %v772_v26 }
  0xa5   : > { %1075 = vmatpush.msra.mxu2 %v771_v28 }
  0xde   : > { %v548_v30 = vpop.f32.mrf.mxu0 }
  0xdf   : > { %v574_v31 = vpop.f32.mrf.mxu1 }
  0xe0   : > { %v575_v33 = vadd.f32 %v574_v31, %v548_v30 }
  0xe3   : > { %v600_v35 = vpop.f32.mrf.mxu2 }
  0xe4   : > { %v601_v37 = vadd.f32 %v600_v35, %v575_v33 }
  0xe6   : > { %v698_v38 = vadd.f32 %v1170_v34, %v601_v37  ;;  %v551_v39 = vpop.f32.mrf.mxu0 }
  0xe7   : > { %v577_v40 = vpop.f32.mrf.mxu1 }
  0xe8   : > { %v701_v41 = vmax.f32 %v698_v38, 0.0  ;;  %v578_v44 = vadd.f32 %v577_v40, %v551_v39 }
  0xea   : > { %1049 = vmatmul.msk.f32.vlgmr.msrb.gmra.mxu2 %vm716_vm2, %v701_v41  ;;  %v719_v50 = vsel %vm716_vm2, %v701_v41, 0.0 }
  0xeb   : > { %v603_v45 = vpop.f32.mrf.mxu2  ;;  %v725_v53 = vrot.slane %v719_v50, 2  ;;  %v732_v54 = vrot.slane %v719_v50, 4 }
  0xec   : > { %v604_v46 = vadd.f32 %v603_v45, %v578_v44 }
  0xee   : > { %v699_v47 = vadd.f32 %v1170_v34, %v604_v46  ;;  %v554_v48 = vpop.f32.mrf.mxu0 }
  0xef   : > { %v580_v49 = vpop.f32.mrf.mxu1 }
  0xf0   : > { %v702_v51 = vmax.f32 %v699_v47, 0.0  ;;  %v581_v52 = vadd.f32 %v580_v49, %v554_v48 }
  0xf1   : > { %v626_v6 = vpop.f32.mrf.mxu3 }
  0xf2   : > { %v733_v55 = vrot.slane %v702_v51, 4  ;;  %810 = vmatmul.f32.gmra.mxu2 %v702_v51  ;;  %v726_v56 = vrot.slane %v702_v51, 2 }
  0xf3   : > { %v606_v57 = vpop.f32.mrf.mxu2 }
  0xf4   : > { %v607_v58 = vadd.f32 %v606_v57, %v581_v52  ;;  %v727_v59 = vsel %vm417_vm1, %v725_v53, %v726_v56  ;;  %v734_v61 = vsel %vm426_vm0, %v732_v54, %v733_v55 }
  0xf5   : > { %830 = vmatmul.f32.vlgmr.msrb.gmra.mxu3 %v727_v59  ;;  %853 = vmatmul.f32.vlgmr.msra.gmra.mxu0 %v734_v61 }
  0xf6   : > { %v700_v0 = vadd.f32 %v1170_v34, %v607_v58 }
  0xf8   : > { %v703_v42 = vmax.f32 %v700_v0, 0.0 }
  0xfa   : > { %v735_v1 = vrot.slane %v703_v42, 4  ;;  %v728_v2 = vrot.slane %v703_v42, 2 }
  0xfc   : > { %v729_v3 = vsel %vm417_vm1, %v726_v56, %v728_v2  ;;  %v736_v5 = vsel %vm426_vm0, %v733_v55, %v735_v1 }
  0xfd   : > { %833 = vmatmul.f32.gmra.mxu3 %v729_v3  ;;  %856 = vmatmul.f32.vlgmr.msra.gmra.mxu2 %v736_v5 }
  0xfe   : > { %v652_v8 = vpop.f32.mrf.mxu0 }
  0xff   : > { %v629_v10 = vpop.f32.mrf.mxu3  ;;  %v653_v13 = vadd.f32 %v652_v8, %v626_v6 }
 0x101   : > { %v678_v9 = vpop.f32.mrf.mxu1 }
 0x102   : > { %v679_v62 = vadd.f32 %v678_v9, %v653_v13 }
 0x104   : > { %v691_v18 = vadd.f32 %v1171_v16, %v679_v62 }
 0x106   : > { %v655_v11 = vpop.f32.mrf.mxu0  ;;  %v865_v23 = vrot.slane %v691_v18, 4 }
 0x107   : > { %v656_v15 = vadd.f32 %v655_v11, %v629_v10 }
 0x108   : > { %v632_v43 = vpop.f32.mrf.mxu3 }
 0x109   : > { %v681_v12 = vpop.f32.mrf.mxu1 }
 0x10a   : > { %v682_v17 = vadd.f32 %v681_v12, %v656_v15 }
 0x10c   : > { %v692_v4 = vadd.f32 %v1171_v16, %v682_v17 }
 0x10e   : > { %v658_v63 = vpop.f32.mrf.mxu0  ;;  %v866_v24 = vrot.slane %v692_v4, 4 }
 0x10f   : > { %v659_v7 = vadd.f32 %v658_v63, %v632_v43 }
 0x110   : > { %v867_v31 = vsel %vm426_vm0, %v865_v23, %v866_v24 }
 0x111   : > { %v684_v19 = vpop.f32.mrf.mxu1 }
 0x112   : > { %v685_v25 = vadd.f32 %v684_v19, %v659_v7 }
 0x114   : > { %v693_v30 = vadd.f32 %v1171_v16, %v685_v25 }
 0x116   : > { %v868_v37 = vrot.slane %v693_v30, 4 }
 0x118   : > { %v869_v41 = vsel %vm426_vm0, %v866_v24, %v868_v37 }
 0x16d   : > { %v808_v60 = vpop.f32.mrf.mxu2 }
 0x16e   : > { %v809_v20 = vadd.f32 %v1172_v14, %v808_v60 }
 0x172   : > { %v854_v26 = vpop.f32.mrf.mxu0 }
 0x175   : > { %v811_v27 = vpop.f32.mrf.mxu2 }
 0x176   : > { %v812_v32 = vadd.f32 %v1172_v14, %v811_v27 }
 0x178   : > { %v831_v21 = vpop.f32.mrf.mxu3 }
 0x179   : > { %v832_v22 = vadd.f32 %v831_v21, %v809_v20 }
 0x17b   : > { %v855_v28 = vadd.f32 %v854_v26, %v832_v22 }
 0x17d   : > { %v860_v29 = vmax.f32 %v855_v28, 0.0 }
 0x17f   : > { %v872_v33 = vadd.f32 %v867_v31, %v860_v29 }
 0x180   : > { %v834_v34 = vpop.f32.mrf.mxu3  ;;  %v857_v38 = vpop.f32.mrf.mxu2 }
 0x181   : > { %v874_v35 = vmax.f32 %v872_v33, 0.0  ;;  %v835_v36 = vadd.f32 %v834_v34, %v812_v32 }
 0x183   : > { %876 = vst [vmem:[%s404_s19] sm:$0xff] %v874_v35  ;;  %v858_v39 = vadd.f32 %v857_v38, %v835_v36 }
 0x185   : > { %v861_v40 = vmax.f32 %v858_v39, 0.0 }
 0x187   : > { %v873_v44 = vadd.f32 %v869_v41, %v861_v40 }
 0x189   : > { %v875_v45 = vmax.f32 %v873_v44, 0.0 }
 0x18b   : > { %877 = vst [vmem:[%s404_s19 + $0x8] sm:$0xff] %v875_v45 }
 0x18c   : > { %1320 = shalt.err (!%p1317_p13)
}
 0x18d   : > { %s1395_s10 = smov 128   ;;  %s1396_s30 = smov 8  }
 0x18e   : > { %1088 = dma.vmem_to_hbm [thread:$0]  (%p1514_p2), %s894_s22, 256, %s896_s20, %s879_s27, %s1395_s10, %s1395_s10, %s1396_s30  }
 0x18f PF: > { %s1713_s13 = sld [smem:[#allocation16_spill]]  ;;  %p1105_p0 = pnand %p1033_p6, %p1521_p5 }
 0x191   : > { %p1106_p4 = pneg %p1105_p0 }
 0x195   : > { %s910_s16 = sand.u32 1, %s1713_s13  }
 0x196   : > { %s911_s17 = scalar_lea.sflag [#allocation4], %s910_s16 }
 0x197   : > { %1362 = dma.done.wait (%p1106_p4), %s911_s17, 256  }
 0x198   : > { %1364 = vsyncadd (%p1106_p4), %s911_s17, 4294967040  ;;  %s27_s29 = sadd.s32 1, %s1387_s29   ;;  %s1715_s18 = sld [smem:[#allocation17_spill]] }
 0x199   : > { %p24_p7 = scmp.ge.s32.totalorder %s27_s29, 4   ;;  %s1716_s26 = sld [smem:[#allocation21_spill]] }
 0x19a   : > { %s1717_s27 = sld [smem:[#allocation18_spill]]  ;;  %s1719_s24 = smov %s1371_s25 }
 0x19b   : > { %s1718_s28 = sld [smem:[#allocation19_spill]]  ;;  %26 = sbr.rel (!%p24_p7) target bundleno = 12 (0xc), region = 114 }
 0x19e   : > { %s1720_s25 = smov %s1715_s18 }
 0x1a0   :  { %917 = vsyncpa [#allocation3], 1 }
 0x1a1   :  { %919 = vsyncpa [#allocation3 + $0x1], 1 }
 0x1a2   :  { %920 = vsyncpa [#allocation6], 1 }
 0x1a3   :  { %922 = vsyncpa [#allocation6 + $0x1], 1 }
 0x1a4   :  { %923 = vsyncpa [#allocation9], 1 }
 0x1a5   :  { %924 = vsyncpa [#allocation4], 1 }
 0x1a6   :  { %926 = vsyncpa [#allocation4 + $0x1], 1 }

</bundles_post_ra>
